<compile_context>
chip_gen: v6e
topology: v6e:2x2x1
jax: 0.10.0
libtpu: 0.0.40
codegen_flags: <defaults>
</compile_context>

<pallas_src>
import functools
import math

import jax
import jax.numpy as jnp
from jax.experimental import pallas as pl
from jax.experimental.pallas import tpu as pltpu


# Dense propagation-polynomial fold is only used below this node count.
_POLY_FOLD_MAX_N = 2048


# ---------------------------------------------------------------------------
# Fused Pallas kernel: whole GCN forward in one launch
# ---------------------------------------------------------------------------

def _gcn_fused_kernel(e_ref, p_ref, w_ref, slab_ref, tot_ref, *, hops):
    """Computes the 4 stage embeddings + their sum in one launch.

    e_ref:    (N, D)   float32   concatenated user/item embeddings
    p_ref:    (N, 4N)  bfloat16  packed [P0|P1|P2|P3] (hops==0, polynomial
                                 already folded) or [R0|R1|R2|R3] (hops==L)
    w_ref:    (D, 4D)  bfloat16  packed [W_u|W_i|WW_u|0]
    slab_ref: (N, 4D)  float32   [step_now | step_pv | step_fav | step_cart]
    tot_ref:  (N, D)   float32   step_now + step_pv + step_fav + step_cart
    """
    n, d = e_ref.shape
    inv = 1.0 / (hops + 1)

    def propagate(k, x_f32):
        m = p_ref[:, k * n:(k + 1) * n]          # static lane slice
        y = jnp.dot(m, x_f32.astype(jnp.bfloat16),
                    preferred_element_type=jnp.float32)
        if hops == 0:                            # polynomial pre-folded
            return y
        # Fallback: explicit L-hop propagation (used only for large N).
        out = x_f32 + y
        acc = y
        for _ in range(hops - 1):                # static, small, unrolled
            acc = jnp.dot(m, acc.astype(jnp.bfloat16),
                          preferred_element_type=jnp.float32)
            out = out + acc
        return out * inv

    def project(x_f32, k):
        w = w_ref[:, k * d:(k + 1) * d]          # static lane slice
        return jnp.dot(x_f32.astype(jnp.bfloat16), w,
                       preferred_element_type=jnp.float32)

    # Store each stage as soon as it is ready (static lane offsets); the vst
    # overlaps the next stage's serial MXU chain.
    step_now = propagate(0, e_ref[...])
    slab_ref[:, 0 * d:1 * d] = step_now
    step_pv = propagate(1, project(step_now, 0))
    slab_ref[:, 1 * d:2 * d] = step_pv
    step_fav = propagate(2, project(step_pv, 1))
    slab_ref[:, 2 * d:3 * d] = step_fav
    step_cart = propagate(3, project(step_fav, 2))
    slab_ref[:, 3 * d:4 * d] = step_cart

    # 3 VPU adds — free filler under MXU slack; kills a downstream XLA fusion.
    tot_ref[...] = step_now + step_pv + step_fav + step_cart


# ---------------------------------------------------------------------------
# Wrappers
# ---------------------------------------------------------------------------

def _full_spec(shape):
    return pl.BlockSpec(shape, lambda: (0,) * len(shape))


def precompute_propagation(mats, num_layers):
    """Hoisted out of the per-step jit path (adjacency is static).

    Returns a lane-dense bf16 (N, 4N) slab and the in-kernel hop count:
    hops == 0 means the L-hop propagation was folded into P_k.
    """
    n = mats[0].shape[0]
    if n <= _POLY_FOLD_MAX_N:
        eye = jnp.eye(n, dtype=jnp.float32)
        inv = 1.0 / (num_layers + 1)

        def poly(r):                 # (I + R + ... + R^L) / (L + 1), f32
            r = r.astype(jnp.float32)
            acc, out = eye, eye
            for _ in range(num_layers):
                acc = r @ acc
                out = out + acc
            return out * inv

        prop_mats = [poly(m) for m in mats]
        hops = 0
    else:
        # TODO(synk): replace this dense fallback with a scalar-prefetch CSR
        # gather kernel tiled over a "parallel" row grid (smaller tiles on
        # v7x: 64 MiB VMEM, 2 TensorCores; fp8 adjacency on v7x only).
        prop_mats = [m.astype(jnp.float32) for m in mats]
        hops = num_layers
    p_packed = jnp.concatenate(prop_mats, axis=1).astype(jnp.bfloat16)
    return p_packed, hops


def gcn_forward(params, p_packed, user_num, item_num, hops):
    e = jnp.concatenate([params["user_embeddings"],
                         params["item_embeddings"]], axis=0).astype(jnp.float32)
    n, d = e.shape

    # One lane-dense (D, 4D) = (32, 128) bf16 weight slab (slot 3 zero-padded).
    # NOTE: params["WW_i"] exists but is unused in the reference forward.
    w_packed = jnp.concatenate(
        [params["W_u"], params["W_i"], params["WW_u"],
         jnp.zeros((d, d), params["W_u"].dtype)], axis=1).astype(jnp.bfloat16)

    matmuls_per_stage = max(hops, 1)
    flops = 4 * 2 * n * n * d * matmuls_per_stage + 3 * 2 * n * d * d
    bytes_accessed = (e.size * 4 + p_packed.size * 2 + w_packed.size * 2
                      + n * 4 * d * 4 + n * d * 4)

    kernel = functools.partial(_gcn_fused_kernel, hops=hops)
    slab, total = pl.pallas_call(
        kernel,
        out_shape=(jax.ShapeDtypeStruct((n, 4 * d), jnp.float32),
                   jax.ShapeDtypeStruct((n, d), jnp.float32)),
        in_specs=[_full_spec((n, d)),
                  _full_spec(tuple(p_packed.shape)),
                  _full_spec((d, 4 * d))],
        out_specs=(_full_spec((n, 4 * d)), _full_spec((n, d))),
        cost_estimate=pl.CostEstimate(flops=int(flops), transcendentals=0,
                                      bytes_accessed=int(bytes_accessed)),
    )(e, p_packed, w_packed)

    step_now = slab[:, 0 * d:1 * d]
    step_pv = slab[:, 1 * d:2 * d]
    step_fav = slab[:, 2 * d:3 * d]
    step_cart = slab[:, 3 * d:4 * d]

    def split_ui(x):
        return x[:user_num], x[user_num:]

    embedding_total_u, embedding_total_i = split_ui(total)
    # Naming mirrors the torch module exactly: its `embedding_pv_*` holds the
    # step_now splits, `embedding_fav_*` holds step_pv, `embedding_cart_*`
    # holds step_fav and `embedding_buy_*` holds step_cart.
    embedding_pv_u, embedding_pv_i = split_ui(step_now)
    embedding_fav_u, embedding_fav_i = split_ui(step_pv)
    embedding_cart_u, embedding_cart_i = split_ui(step_fav)
    embedding_buy_u, embedding_buy_i = split_ui(step_cart)

    embedding_ulist = [embedding_pv_u, embedding_fav_u,
                       embedding_cart_u, embedding_buy_u]
    embedding_ilist = [embedding_pv_i, embedding_fav_i,
                       embedding_cart_i, embedding_buy_i]
    return embedding_total_u, embedding_total_i, embedding_ulist, embedding_ilist


# ---------------------------------------------------------------------------
# Deterministic parameter / adjacency setup
# ---------------------------------------------------------------------------

def xavier_uniform(key, shape):
    fan_in, fan_out = shape[0], shape[1]
    bound = math.sqrt(6.0 / (fan_in + fan_out))
    return jax.random.uniform(key, shape, jnp.float32, -bound, bound)


def make_adjacency(key, n):
    """Dense stand-in for the sparse normalized behavior matrix (row-normalized)."""
    kmask, kval = jax.random.split(key)
    mask = (jax.random.uniform(kmask, (n, n)) < 0.3).astype(jnp.float32)
    vals = jax.random.uniform(kval, (n, n), jnp.float32, 0.1, 1.0) * mask
    row_sum = jnp.maximum(vals.sum(axis=1, keepdims=True), 1e-6)
    return vals / row_sum


if __name__ == "__main__":
    user_num = 12
    item_num = 20
    hidden_dim = 32
    num_layers = 2          # len(gnn_layer) in the reference module
    n_total = user_num + item_num   # 32

    key = jax.random.PRNGKey(0)
    keys = jax.random.split(key, 10)

    params = {
        "user_embeddings": xavier_uniform(keys[0], (user_num, hidden_dim)),
        "item_embeddings": xavier_uniform(keys[1], (item_num, hidden_dim)),
        "W_u": xavier_uniform(keys[2], (hidden_dim, hidden_dim)),
        "W_i": xavier_uniform(keys[3], (hidden_dim, hidden_dim)),
        "WW_u": xavier_uniform(keys[4], (hidden_dim, hidden_dim)),
        "WW_i": xavier_uniform(keys[5], (hidden_dim, hidden_dim)),  # unused in fwd
    }
    mats = tuple(make_adjacency(keys[6 + i], n_total) for i in range(4))

    # Static-across-steps setup (hoisted out of the per-call jit path).
    p_packed, hops = precompute_propagation(mats, num_layers)
    p_packed = jax.block_until_ready(p_packed)

    fwd = jax.jit(functools.partial(gcn_forward,
                                    user_num=user_num,
                                    item_num=item_num,
                                    hops=hops))
    total_u, total_i, ulist, ilist = fwd(params, p_packed)
    jax.block_until_ready((total_u, total_i, ulist, ilist))

    # ------------------------------------------------------------------
    # Pure-JAX references for sanity checking.
    # ------------------------------------------------------------------
    E = jnp.concatenate([params["user_embeddings"],
                         params["item_embeddings"]], axis=0)

    # (a) Numerically-matched reference: same folded bf16 P, bf16 MXU inputs,
    #     f32 accumulation — mirrors the kernel op-for-op.
    P_bf = [p_packed[:, k * n_total:(k + 1) * n_total] for k in range(4)]
    W_bf = [params[k].astype(jnp.bfloat16) for k in ("W_u", "W_i", "WW_u")]

    def mm_p(p, x):
        return jnp.dot(p, x.astype(jnp.bfloat16),
                       preferred_element_type=jnp.float32)

    def mm_w(x, w):
        return jnp.dot(x.astype(jnp.bfloat16), w,
                       preferred_element_type=jnp.float32)

    s0m = mm_p(P_bf[0], E)
    s1m = mm_p(P_bf[1], mm_w(s0m, W_bf[0]))
    s2m = mm_p(P_bf[2], mm_w(s1m, W_bf[1]))
    s3m = mm_p(P_bf[3], mm_w(s2m, W_bf[2]))
    totm = s0m + s1m + s2m + s3m

    tot_got = jnp.concatenate([total_u, total_i], axis=0)
    assert jnp.allclose(tot_got, totm, atol=5e-4, rtol=5e-4)
    for got_u, got_i, want in zip(ulist, ilist, (s0m, s1m, s2m, s3m)):
        assert jnp.allclose(got_u, want[:user_num], atol=5e-4, rtol=5e-4)
        assert jnp.allclose(got_i, want[user_num:], atol=5e-4, rtol=5e-4)

    # (b) Loose check vs. full-f32 step-by-step math (torch semantics).
    def prop_f32(R, X):
        out, acc = X, X
        for _ in range(num_layers):
            acc = R @ acc
            out = out + acc
        return out / (num_layers + 1)

    s0 = prop_f32(mats[0], E)
    s1 = prop_f32(mats[1], s0 @ params["W_u"])
    s2 = prop_f32(mats[2], s1 @ params["W_i"])
    s3 = prop_f32(mats[3], s2 @ params["WW_u"])
    tot32 = s0 + s1 + s2 + s3
    assert jnp.allclose(tot_got, tot32, atol=2e-2, rtol=2e-2)

    assert total_u.shape == (user_num, hidden_dim)
    assert total_i.shape == (item_num, hidden_dim)
    assert len(ulist) == 4 and len(ilist) == 4

    print("KERNEL_OK")
</pallas_src>

<mosaic_0001>
module attributes {stable_mosaic.version = 11 : i64} {
  func.func @_gcn_fused_kernel(%arg0: memref<32x32xf32, #tpu.memory_space<vmem>>, %arg1: memref<32x128xbf16, #tpu.memory_space<vmem>>, %arg2: memref<32x128xbf16, #tpu.memory_space<vmem>>, %arg3: memref<32x128xf32, #tpu.memory_space<vmem>>, %arg4: memref<32x32xf32, #tpu.memory_space<vmem>>) attributes {dimension_semantics = [], scalar_prefetch = 0 : i64, scratch_operands = 0 : i64, tpu.core_type = #tpu.core_type<tc>} {
    %c0 = arith.constant 0 : index
    %c0_0 = arith.constant 0 : index
    %0 = vector.load %arg0[%c0, %c0_0] : memref<32x32xf32, #tpu.memory_space<vmem>>, vector<32x32xf32>
    %c0_1 = arith.constant 0 : index
    %c0_2 = arith.constant 0 : index
    %1 = vector.load %arg1[%c0_1, %c0_2] : memref<32x128xbf16, #tpu.memory_space<vmem>>, vector<32x32xbf16>
    %2 = arith.truncf %0 : vector<32x32xf32> to vector<32x32xbf16>
    %cst = arith.constant dense<0.000000e+00> : vector<32x32xf32>
    %3 = tpu.matmul %1, %2, %cst {dimension_numbers = #tpu.dot_dimension_numbers<[1], [0], [0], [1], [0, 0, 1, 1], [], []>} : vector<32x32xbf16>, vector<32x32xbf16>, vector<32x32xf32> -> vector<32x32xf32>
    %c0_3 = arith.constant 0 : index
    %c0_4 = arith.constant 0 : index
    %4 = vector.load %arg3[%c0_3, %c0_4] : memref<32x128xf32, #tpu.memory_space<vmem>>, vector<32x32xf32>
    tpu.vector_store %arg3[%c0_3, %c0_4], %3 {strides = array<i32>} : memref<32x128xf32, #tpu.memory_space<vmem>>, vector<32x32xf32>,
    %c0_5 = arith.constant 0 : index
    %c0_6 = arith.constant 0 : index
    %5 = vector.load %arg2[%c0_5, %c0_6] : memref<32x128xbf16, #tpu.memory_space<vmem>>, vector<32x32xbf16>
    %6 = arith.truncf %3 : vector<32x32xf32> to vector<32x32xbf16>
    %cst_7 = arith.constant dense<0.000000e+00> : vector<32x32xf32>
    %7 = tpu.matmul %6, %5, %cst_7 {dimension_numbers = #tpu.dot_dimension_numbers<[1], [0], [0], [1], [0, 0, 1, 1], [], []>} : vector<32x32xbf16>, vector<32x32xbf16>, vector<32x32xf32> -> vector<32x32xf32>
    %c0_8 = arith.constant 0 : index
    %c32 = arith.constant 32 : index
    %8 = vector.load %arg1[%c0_8, %c32] : memref<32x128xbf16, #tpu.memory_space<vmem>>, vector<32x32xbf16>
    %9 = arith.truncf %7 : vector<32x32xf32> to vector<32x32xbf16>
    %cst_9 = arith.constant dense<0.000000e+00> : vector<32x32xf32>
    %10 = tpu.matmul %8, %9, %cst_9 {dimension_numbers = #tpu.dot_dimension_numbers<[1], [0], [0], [1], [0, 0, 1, 1], [], []>} : vector<32x32xbf16>, vector<32x32xbf16>, vector<32x32xf32> -> vector<32x32xf32>
    %c0_10 = arith.constant 0 : index
    %c32_11 = arith.constant 32 : index
    %11 = vector.load %arg3[%c0_10, %c32_11] : memref<32x128xf32, #tpu.memory_space<vmem>>, vector<32x32xf32>
    tpu.vector_store %arg3[%c0_10, %c32_11], %10 {strides = array<i32>} : memref<32x128xf32, #tpu.memory_space<vmem>>, vector<32x32xf32>,
    %c0_12 = arith.constant 0 : index
    %c32_13 = arith.constant 32 : index
    %12 = vector.load %arg2[%c0_12, %c32_13] : memref<32x128xbf16, #tpu.memory_space<vmem>>, vector<32x32xbf16>
    %13 = arith.truncf %10 : vector<32x32xf32> to vector<32x32xbf16>
    %cst_14 = arith.constant dense<0.000000e+00> : vector<32x32xf32>
    %14 = tpu.matmul %13, %12, %cst_14 {dimension_numbers = #tpu.dot_dimension_numbers<[1], [0], [0], [1], [0, 0, 1, 1], [], []>} : vector<32x32xbf16>, vector<32x32xbf16>, vector<32x32xf32> -> vector<32x32xf32>
    %c0_15 = arith.constant 0 : index
    %c64 = arith.constant 64 : index
    %15 = vector.load %arg1[%c0_15, %c64] : memref<32x128xbf16, #tpu.memory_space<vmem>>, vector<32x32xbf16>
    %16 = arith.truncf %14 : vector<32x32xf32> to vector<32x32xbf16>
    %cst_16 = arith.constant dense<0.000000e+00> : vector<32x32xf32>
    %17 = tpu.matmul %15, %16, %cst_16 {dimension_numbers = #tpu.dot_dimension_numbers<[1], [0], [0], [1], [0, 0, 1, 1], [], []>} : vector<32x32xbf16>, vector<32x32xbf16>, vector<32x32xf32> -> vector<32x32xf32>
    %c0_17 = arith.constant 0 : index
    %c64_18 = arith.constant 64 : index
    %18 = vector.load %arg3[%c0_17, %c64_18] : memref<32x128xf32, #tpu.memory_space<vmem>>, vector<32x32xf32>
    tpu.vector_store %arg3[%c0_17, %c64_18], %17 {strides = array<i32>} : memref<32x128xf32, #tpu.memory_space<vmem>>, vector<32x32xf32>,
    %c0_19 = arith.constant 0 : index
    %c64_20 = arith.constant 64 : index
    %19 = vector.load %arg2[%c0_19, %c64_20] : memref<32x128xbf16, #tpu.memory_space<vmem>>, vector<32x32xbf16>
    %20 = arith.truncf %17 : vector<32x32xf32> to vector<32x32xbf16>
    %cst_21 = arith.constant dense<0.000000e+00> : vector<32x32xf32>
    %21 = tpu.matmul %20, %19, %cst_21 {dimension_numbers = #tpu.dot_dimension_numbers<[1], [0], [0], [1], [0, 0, 1, 1], [], []>} : vector<32x32xbf16>, vector<32x32xbf16>, vector<32x32xf32> -> vector<32x32xf32>
    %c0_22 = arith.constant 0 : index
    %c96 = arith.constant 96 : index
    %22 = vector.load %arg1[%c0_22, %c96] : memref<32x128xbf16, #tpu.memory_space<vmem>>, vector<32x32xbf16>
    %23 = arith.truncf %21 : vector<32x32xf32> to vector<32x32xbf16>
    %cst_23 = arith.constant dense<0.000000e+00> : vector<32x32xf32>
    %24 = tpu.matmul %22, %23, %cst_23 {dimension_numbers = #tpu.dot_dimension_numbers<[1], [0], [0], [1], [0, 0, 1, 1], [], []>} : vector<32x32xbf16>, vector<32x32xbf16>, vector<32x32xf32> -> vector<32x32xf32>
    %c0_24 = arith.constant 0 : index
    %c96_25 = arith.constant 96 : index
    %25 = vector.load %arg3[%c0_24, %c96_25] : memref<32x128xf32, #tpu.memory_space<vmem>>, vector<32x32xf32>
    tpu.vector_store %arg3[%c0_24, %c96_25], %24 {strides = array<i32>} : memref<32x128xf32, #tpu.memory_space<vmem>>, vector<32x32xf32>,
    %26 = arith.addf %3, %10 : vector<32x32xf32>
    %27 = arith.addf %26, %17 : vector<32x32xf32>
    %28 = arith.addf %27, %24 : vector<32x32xf32>
    %c0_26 = arith.constant 0 : index
    %c0_27 = arith.constant 0 : index
    %29 = vector.load %arg4[%c0_26, %c0_27] : memref<32x32xf32, #tpu.memory_space<vmem>>, vector<32x32xf32>
    tpu.vector_store %arg4[%c0_26, %c0_27], %28 {strides = array<i32>} : memref<32x32xf32, #tpu.memory_space<vmem>>, vector<32x32xf32>,
    return
  }
}

</mosaic_0001>

<bundles_post_ra>
// kernel: gcn_forward.1
= control target key start
LH: loop header
LB: loop body
LE: loop exit
PB: predicated region body
PF: predicated region fallthrough
CT: control target
= control target key end

     0   :  { %vm37_vm0 = vcmask 261120   ;;  %s765_s6 = smov 96   ;;  %s766_s23 = smov 64   ;;  %vm261_vm1 = vcmask 523520   ;;  %vm434_vm2 = vcmask 785920   ;;  %vm607_vm3 = vcmask 1048320   ;;  %s976_s0 = inlined_call_operand.vmem [shape: f32[32,32], index: 0, kind: input, shape index: {}]   ;;  %s977_s1 = inlined_call_operand.vmem [shape: bf16[32,128], index: 1, kind: input, shape index: {}]   ;;  %s978_s2 = inlined_call_operand.vmem [shape: bf16[32,128], index: 2, kind: input, shape index: {}]   ;;  %s979_s3 = inlined_call_operand.vmem [shape: f32[32,128], index: 3, kind: output, shape index: {0}]   ;;  %s980_s4 = inlined_call_operand.vmem [shape: f32[32,32], index: 4, kind: output, shape index: {1}]  }
   0x1   :  { %v19_v0 = vld [vmem:[%s976_s0 + $0x10] sm:$0xff]  ;;  %v20_v1 = vld [vmem:[%s976_s0 + $0x18] sm:$0xff]  ;;  %v17_v2 = vld [vmem:[%s976_s0] sm:$0xff]  ;;  %s767_s5 = smov 32  }
   0x2   :  { %v26_v3 = vpack.c.bf16 %v20_v1, %v19_v0  ;;  %v18_v4 = vld [vmem:[%s976_s0 + $0x8] sm:$0xff]  ;;  %v751_v6 = vld [vmem:[%s977_s1] sm:$0xff]  }
   0x3   :  { %v25_v5 = vpack.c.bf16 %v18_v4, %v17_v2  ;;  %696 = vmatprep.mubr.msk.bf16.mxu0 %vm37_vm0, %v751_v6  ;;  %v752_v7 = vld [vmem:[%s977_s1 + $0x8] sm:$0xff]   ;;  %v754_v9 = vld [vmem:[%s978_s2] sm:$0xff]  }
   0x4   :  { %692 = vmatprep.subr.bf16.mxu0 %v26_v3  ;;  %v753_v8 = vld [vmem:[%s978_s2 + $0x8] sm:$0xff]   ;;  %v755_v10 = vld [vmem:[%s977_s1] sm:$0xff]  }
   0x5   :  { %693 = vmatpush3.bf16.msra.mxu0 %v26_v3  ;;  %700 = vmatprep.subr.bf16.mxu1 %v753_v8  ;;  %v756_v11 = vld [vmem:[%s977_s1 + $0x8] sm:$0xff]   ;;  %v759_v20 = vld [vmem:[%s977_s1] sm:$0xff]  }
   0x6   :  { %694 = vmatprep.subr.bf16.mxu0 %v25_v5  ;;  %701 = vmatpush3.bf16.msra.mxu1 %v753_v8  ;;  %v757_v19 = vld [vmem:[%s978_s2 + $0x8] sm:$0xff]   ;;  %v758_v21 = vld [vmem:[%s978_s2] sm:$0xff]  }
   0x7   :  { %702 = vmatprep.subr.bf16.mxu1 %v754_v9  ;;  %186 = vrot.lane.b32.xlu0 %v755_v10, %s765_s6  ;;  %v761_v22 = vld [vmem:[%s978_s2 + $0x8] sm:$0xff]   ;;  %v763_v24 = vld [vmem:[%s977_s1] sm:$0xff]  }
   0x8   :  { %284 = vrot.lane.b32.xlu1 %v757_v19, %s765_s6  ;;  %v760_v23 = vld [vmem:[%s977_s1 + $0x8] sm:$0xff]   ;;  %v762_v25 = vld [vmem:[%s978_s2] sm:$0xff]  }
   0x9   :  { %695 = vmatpush3.bf16.msra.mxu0 %v25_v5  ;;  %v764_v34 = vld [vmem:[%s977_s1 + $0x8] sm:$0xff]  }
   0xa   :  { %703 = vmatpush3.bf16.msra.mxu1 %v754_v9 }
   0xb   :  { %188 = vrot.lane.b32.xlu0 %v756_v11, %s765_s6 }
   0xc   :  { %697 = vmatmul.mubr.msk.bf16.vlgmr.msra.gmra.mxu0 %vm37_vm0, %v752_v7  ;;  %282 = vrot.lane.b32.xlu1 %v758_v21, %s765_s6 }
   0xf   :  { %359 = vrot.lane.b32.xlu0 %v759_v20, %s766_s23 }
  0x10   :  { %361 = vrot.lane.b32.xlu1 %v760_v23, %s766_s23 }
  0x13   :  { %457 = vrot.lane.b32.xlu0 %v761_v22, %s766_s23 }
  0x14   :  { %455 = vrot.lane.b32.xlu1 %v762_v25, %s766_s23 }
  0x17   :  { %532 = vrot.lane.b32.xlu0 %v763_v24, %s767_s5 }
  0x18   :  { %534 = vrot.lane.b32.xlu1 %v764_v34, %s767_s5 }
  0x79   :  { %v187_v18 = vpop.permute.xlu0 %186 }
  0x7a   :  { %712 = vmatprep.mubr.msk.bf16.mxu0 %vm37_vm0, %v187_v18  ;;  %v285_v28 = vpop.permute.xlu1 %284 }
  0x7b   :  { %716 = vmatprep.subr.bf16.mxu1 %v285_v28 }
  0x7d   :  { %v189_v33 = vpop.permute.xlu0 %188 }
  0x7e   :  { %v283_v35 = vpop.permute.xlu1 %282 }
  0x81   :  { %v360_v36 = vpop.permute.xlu0 %359 }
  0x82   :  { %v362_v41 = vpop.permute.xlu1 %361 }
  0x85   :  { %v458_v37 = vpop.permute.xlu0 %457 }
  0x86   :  { %v456_v45 = vpop.permute.xlu1 %455 }
  0x89   :  { %v533_v46 = vpop.permute.xlu0 %532 }
  0x8a   :  { %v535_v47 = vpop.permute.xlu1 %534 }
  0xcc   :  { %v827_v12 = vpop.f32.mrf.mxu0 }
  0xcd   :  { %95 = vst.msk [vmem:[%s979_s3 + $0x10] sm:$0xff] %vm37_vm0, %v827_v12 }
  0xce   :  { %v834_v13 = vpop.f32.mrf.mxu0 }
  0xcf   :  { %93 = vst.msk [vmem:[%s979_s3] sm:$0xff] %vm37_vm0, %v834_v13 }
  0xd0   :  { %v841_v14 = vpop.f32.mrf.mxu0 }
  0xd1   :  { %96 = vst.msk [vmem:[%s979_s3 + $0x18] sm:$0xff] %vm37_vm0, %v841_v14  ;;  %v102_v17 = vpack.c.bf16 %v841_v14, %v827_v12 }
  0xd2   :  { %v848_v15 = vpop.f32.mrf.mxu0 }
  0xd3   :  { %94 = vst.msk [vmem:[%s979_s3 + $0x8] sm:$0xff] %vm37_vm0, %v848_v15  ;;  %v101_v16 = vpack.c.bf16 %v848_v15, %v834_v13 }
  0xd5   :  { %704 = vmatprep.mubr.msk.bf16.mxu1 %vm37_vm0, %v101_v16 }
  0xd6   :  { %705 = vmatmul.mubr.msk.bf16.vlgmr.msra.gmra.mxu1 %vm37_vm0, %v102_v17 }
  0xd7   :  { %717 = vmatpush3.bf16.msra.mxu1 %v285_v28 }
  0xd8   :  { %718 = vmatprep.subr.bf16.mxu1 %v283_v35 }
  0xdb   :  { %719 = vmatpush3.bf16.msra.mxu1 %v283_v35 }
  0xdc   :  { %732 = vmatprep.subr.bf16.mxu1 %v458_v37 }
 0x196   :  { %v706_v26 = vpop.f32.mrf.mxu1 }
 0x198   :  { %v155_v27 = vpop.f32.mrf.mxu1 }
 0x19a   :  { %v707_v29 = vpop.f32.mrf.mxu1 }
 0x19b   :  { %v175_v30 = vpack.c.bf16 %v707_v29, %v706_v26 }
 0x19c   :  { %v158_v31 = vpop.f32.mrf.mxu1 }
 0x19d   :  { %v174_v32 = vpack.c.bf16 %v158_v31, %v155_v27  ;;  %708 = vmatprep.subr.bf16.mxu0 %v175_v30 }
 0x19e   :  { %709 = vmatpush3.bf16.msra.mxu0 %v175_v30 }
 0x19f   :  { %710 = vmatprep.subr.bf16.mxu0 %v174_v32 }
 0x1a2   :  { %711 = vmatpush3.bf16.msra.mxu0 %v174_v32 }
 0x1a5   :  { %713 = vmatmul.mubr.msk.bf16.vlgmr.msra.gmra.mxu0 %vm37_vm0, %v189_v33 }
 0x1a6   :  { %728 = vmatprep.mubr.msk.bf16.mxu0 %vm37_vm0, %v360_v36 }
 0x265   :  { %v714_v38 = vpop.f32.mrf.mxu0 }
 0x266   :  { %253 = vrot.lane.b32.xlu0 %v714_v38, %s767_s5  ;;  %v614_v58 = vadd.f32 %v714_v38, %v827_v12 }
 0x267   :  { %v230_v39 = vpop.f32.mrf.mxu0 }
 0x268   :  { %v612_v60 = vadd.f32 %v230_v39, %v834_v13 }
 0x269   :  { %v715_v40 = vpop.f32.mrf.mxu0 }
 0x26a   :  { %249 = vrot.lane.b32.xlu0 %v230_v39, %s767_s5  ;;  %255 = vrot.lane.b32.xlu1 %v715_v40, %s767_s5  ;;  %v271_v44 = vpack.c.bf16 %v715_v40, %v714_v38  ;;  %v615_v63 = vadd.f32 %v715_v40, %v841_v14 }
 0x26b   :  { %v899_v42 = vpop.f32.mrf.mxu0 }
 0x26c   :  { %v270_v43 = vpack.c.bf16 %v899_v42, %v230_v39  ;;  %v613_v20 = vadd.f32 %v899_v42, %v848_v15 }
 0x26e   :  { %251 = vrot.lane.b32.xlu1 %v899_v42, %s767_s5  ;;  %720 = vmatprep.mubr.msk.bf16.mxu1 %vm37_vm0, %v270_v43 }
 0x26f   :  { %721 = vmatmul.mubr.msk.bf16.vlgmr.msra.gmra.mxu1 %vm37_vm0, %v271_v44 }
 0x270   :  { %733 = vmatpush3.bf16.msra.mxu1 %v458_v37 }
 0x271   :  { %734 = vmatprep.subr.bf16.mxu1 %v456_v45 }
 0x274   :  { %735 = vmatpush3.bf16.msra.mxu1 %v456_v45 }
 0x2d8   :  { %v254_v48 = vpop.permute.xlu0 %253 }
 0x2d9   :  { %264 = vst.msk [vmem:[%s979_s3 + $0x10] sm:$0xff] %vm261_vm1, %v254_v48 }
 0x2dc   :  { %v250_v49 = vpop.permute.xlu0 %249  ;;  %v256_v50 = vpop.permute.xlu1 %255 }
 0x2dd   :  { %262 = vst.msk [vmem:[%s979_s3] sm:$0xff] %vm261_vm1, %v250_v49  ;;  %265 = vst.msk [vmem:[%s979_s3 + $0x18] sm:$0xff] %vm261_vm1, %v256_v50 }
 0x2e0   :  { %v252_v51 = vpop.permute.xlu1 %251 }
 0x2e1   :  { %263 = vst.msk [vmem:[%s979_s3 + $0x8] sm:$0xff] %vm261_vm1, %v252_v51 }
 0x32f   :  { %v722_v52 = vpop.f32.mrf.mxu1 }
 0x331   :  { %v328_v53 = vpop.f32.mrf.mxu1 }
 0x333   :  { %v723_v54 = vpop.f32.mrf.mxu1 }
 0x334   :  { %v348_v55 = vpack.c.bf16 %v723_v54, %v722_v52 }
 0x335   :  { %v331_v56 = vpop.f32.mrf.mxu1 }
 0x336   :  { %v347_v57 = vpack.c.bf16 %v331_v56, %v328_v53  ;;  %724 = vmatprep.subr.bf16.mxu0 %v348_v55 }
 0x337   :  { %725 = vmatpush3.bf16.msra.mxu0 %v348_v55 }
 0x338   :  { %726 = vmatprep.subr.bf16.mxu0 %v347_v57 }
 0x33b   :  { %727 = vmatpush3.bf16.msra.mxu0 %v347_v57 }
 0x33e   :  { %729 = vmatmul.mubr.msk.bf16.vlgmr.msra.gmra.mxu0 %vm37_vm0, %v362_v41 }
 0x33f   :  { %744 = vmatprep.mubr.msk.bf16.mxu0 %vm37_vm0, %v533_v46 }
 0x3fe   :  { %v730_v59 = vpop.f32.mrf.mxu0 }
 0x3ff   :  { %v618_v61 = vadd.f32 %v730_v59, %v614_v58  ;;  %426 = vrot.lane.b32.xlu0 %v730_v59, %s766_s23 }
 0x400   :  { %v403_v62 = vpop.f32.mrf.mxu0 }
 0x401   :  { %v616_v0 = vadd.f32 %v612_v60, %v403_v62 }
 0x402   :  { %v731_v1 = vpop.f32.mrf.mxu0 }
 0x403   :  { %v619_v2 = vadd.f32 %v731_v1, %v615_v63  ;;  %422 = vrot.lane.b32.xlu0 %v403_v62, %s766_s23  ;;  %428 = vrot.lane.b32.xlu1 %v731_v1, %s766_s23  ;;  %v444_v5 = vpack.c.bf16 %v731_v1, %v730_v59 }
 0x404   :  { %v406_v3 = vpop.f32.mrf.mxu0 }
 0x405   :  { %v443_v4 = vpack.c.bf16 %v406_v3, %v403_v62  ;;  %v617_v24 = vadd.f32 %v613_v20, %v406_v3 }
 0x407   :  { %424 = vrot.lane.b32.xlu1 %v406_v3, %s766_s23  ;;  %736 = vmatprep.mubr.msk.bf16.mxu1 %vm37_vm0, %v443_v4 }
 0x408   :  { %737 = vmatmul.mubr.msk.bf16.vlgmr.msra.gmra.mxu1 %vm37_vm0, %v444_v5 }
 0x471   :  { %v427_v6 = vpop.permute.xlu0 %426 }
 0x472   :  { %437 = vst.msk [vmem:[%s979_s3 + $0x10] sm:$0xff] %vm434_vm2, %v427_v6 }
 0x475   :  { %v423_v7 = vpop.permute.xlu0 %422  ;;  %v429_v8 = vpop.permute.xlu1 %428 }
 0x476   :  { %435 = vst.msk [vmem:[%s979_s3] sm:$0xff] %vm434_vm2, %v423_v7  ;;  %438 = vst.msk [vmem:[%s979_s3 + $0x18] sm:$0xff] %vm434_vm2, %v429_v8 }
 0x479   :  { %v425_v9 = vpop.permute.xlu1 %424 }
 0x47a   :  { %436 = vst.msk [vmem:[%s979_s3 + $0x8] sm:$0xff] %vm434_vm2, %v425_v9 }
 0x4c8   :  { %v738_v10 = vpop.f32.mrf.mxu1 }
 0x4ca   :  { %v501_v11 = vpop.f32.mrf.mxu1 }
 0x4cc   :  { %v739_v12 = vpop.f32.mrf.mxu1 }
 0x4cd   :  { %v521_v13 = vpack.c.bf16 %v739_v12, %v738_v10 }
 0x4ce   :  { %v504_v14 = vpop.f32.mrf.mxu1 }
 0x4cf   :  { %v520_v16 = vpack.c.bf16 %v504_v14, %v501_v11  ;;  %740 = vmatprep.subr.bf16.mxu0 %v521_v13 }
 0x4d0   :  { %741 = vmatpush3.bf16.msra.mxu0 %v521_v13 }
 0x4d1   :  { %742 = vmatprep.subr.bf16.mxu0 %v520_v16 }
 0x4d4   :  { %743 = vmatpush3.bf16.msra.mxu0 %v520_v16 }
 0x4d7   :  { %745 = vmatmul.mubr.msk.bf16.vlgmr.msra.gmra.mxu0 %vm37_vm0, %v535_v47 }
 0x597   :  { %v746_v17 = vpop.f32.mrf.mxu0 }
 0x598   :  { %v622_v18 = vadd.f32 %v746_v17, %v618_v61 }
 0x599   :  { %v576_v19 = vpop.f32.mrf.mxu0 }
 0x59a   :  { %626 = vst.msk [vmem:[%s980_s4 + $0x10] sm:$0xff] %vm37_vm0, %v622_v18  ;;  %v620_v21 = vadd.f32 %v616_v0, %v576_v19  ;;  %595 = vrot.lane.b32.xlu0 %v576_v19, %s765_s6 }
 0x59b   :  { %v747_v22 = vpop.f32.mrf.mxu0 }
 0x59c   :  { %624 = vst.msk [vmem:[%s980_s4] sm:$0xff] %vm37_vm0, %v620_v21  ;;  %v623_v23 = vadd.f32 %v747_v22, %v619_v2 }
 0x59d   :  { %v579_v25 = vpop.f32.mrf.mxu0 }
 0x59e   :  { %627 = vst.msk [vmem:[%s980_s4 + $0x18] sm:$0xff] %vm37_vm0, %v623_v23  ;;  %v621_v15 = vadd.f32 %v617_v24, %v579_v25  ;;  %599 = vrot.lane.b32.xlu0 %v746_v17, %s765_s6  ;;  %597 = vrot.lane.b32.xlu1 %v579_v25, %s765_s6 }
 0x5a0   :  { %625 = vst.msk [vmem:[%s980_s4 + $0x8] sm:$0xff] %vm37_vm0, %v621_v15 }
 0x5a2   :  { %601 = vrot.lane.b32.xlu1 %v747_v22, %s765_s6 }
 0x60c   :  { %v596_v26 = vpop.permute.xlu0 %595 }
 0x60d   :  { %608 = vst.msk [vmem:[%s979_s3] sm:$0xff] %vm607_vm3, %v596_v26 }
 0x610   :  { %v600_v27 = vpop.permute.xlu0 %599  ;;  %v598_v28 = vpop.permute.xlu1 %597 }
 0x611   :  { %610 = vst.msk [vmem:[%s979_s3 + $0x10] sm:$0xff] %vm607_vm3, %v600_v27  ;;  %609 = vst.msk [vmem:[%s979_s3 + $0x8] sm:$0xff] %vm607_vm3, %v598_v28 }
 0x614   :  { %v602_v29 = vpop.permute.xlu1 %601 }
 0x615   :  { %611 = vst.msk [vmem:[%s979_s3 + $0x18] sm:$0xff] %vm607_vm3, %v602_v29 }

</bundles_post_ra>
